<compile_context>
chip_gen: v5e
topology: v5e:2x2
jax: 0.10.0
libtpu: 0.0.40
codegen_flags: <defaults>
</compile_context>

<pallas_src>
import functools

import jax
import jax.numpy as jnp
from jax.experimental import pallas as pl
from jax.experimental.pallas import tpu as pltpu


def _round_up(x, m):
    return (x + m - 1) // m * m


# ----------------------------------------------------------------------------
# Fused kernel: conv3x3 (BN-scaled weights) + bias + LeakyReLU + conv1x1 + bias
# ----------------------------------------------------------------------------
def def_head_kernel(x_ref, w1_ref, b1_ref, w2_ref, b2_ref, o_ref, *, H, W):
    # x_ref : (NB, Cin_pad, HW) bf16   flat images, HW on the lane axis
    # w1_ref: (Cmid, 9*Cin_pad) bf16   3x3 weights, BN scale pre-folded, K order (dy,dx,c)
    # b1_ref: (Cmid, 1)         f32    folded BN bias
    # w2_ref: (Cout, Cmid)      bf16   1x1 weights
    # b2_ref: (Cout, 1)         f32    1x1 bias
    # o_ref : (NB, Cout, HW)    f32
    NB, Cin_pad, HW = x_ref.shape

    # Border-validity masks: built in-kernel (no extra input DMA), broadcast to the full
    # (Cin_pad, HW) tap shape exactly once and reused by every tap.
    flat = jax.lax.broadcasted_iota(jnp.int32, (1, HW), 1)
    col = flat % W
    f32 = jnp.float32
    top_f = jnp.broadcast_to((flat >= W).astype(f32), (Cin_pad, HW))            # row-1 ok
    bot_f = jnp.broadcast_to((flat < (H - 1) * W).astype(f32), (Cin_pad, HW))   # row+1 ok
    left_f = jnp.broadcast_to((col >= 1).astype(f32), (Cin_pad, HW))            # col-1 ok
    right_f = jnp.broadcast_to((col <= W - 2).astype(f32), (Cin_pad, HW))       # col+1 ok

    w1 = w1_ref[...]
    w2 = w2_ref[...]
    b1 = b1_ref[...]
    b2 = b2_ref[...]

    for b in range(NB):  # unrolled at trace time (NB is small & static)
        xb = x_ref[b].astype(jnp.float32)                      # (Cin_pad, HW), VPU in f32

        # im2col: 9 lane-rotations (XLU), border-masked, stacked at 8-aligned sublane
        # offsets -> copy-free concat -> one MXU matmul with K = 9*Cin_pad.
        taps = []
        for dy in range(3):
            for dx in range(3):
                off = (dy - 1) * W + (dx - 1)
                t = xb if off == 0 else pltpu.roll(xb, (-off) % HW, axis=1)
                if dy == 0:
                    t = t * top_f
                elif dy == 2:
                    t = t * bot_f
                if dx == 0:
                    t = t * left_f
                elif dx == 2:
                    t = t * right_f
                taps.append(t)
        patch = jnp.concatenate(taps, axis=0).astype(jnp.bfloat16)   # (9*Cin_pad, HW)

        # conv3x3 (BN scale already folded into w1) + BN bias + LeakyReLU(0.1)
        h = jnp.dot(w1, patch, preferred_element_type=jnp.float32) + b1
        h = jnp.where(h > 0, h, 0.1 * h)                             # (Cmid, HW) f32

        # fused 1x1 conv + bias — second MXU matmul; result never leaves VMEM until store
        y = jnp.dot(w2, h.astype(jnp.bfloat16),
                    preferred_element_type=jnp.float32) + b2
        o_ref[b] = y.astype(o_ref.dtype)                             # lane-dense store


# ----------------------------------------------------------------------------
# Wrapper (NCHW in / NCHW out, PyTorch parameter layouts)
# ----------------------------------------------------------------------------
def def_head_forward(x_nchw, params, *, images_per_step=None):
    N, Cin, H, W = x_nchw.shape
    HW = H * W
    Cin_pad = _round_up(Cin, 8)                         # sublane-tile alignment for taps

    w1 = params["w1"]                                   # (Cmid, Cin, 3, 3) OIHW
    Cmid = w1.shape[0]
    w2 = params["w2"].reshape(params["w2"].shape[0], Cmid)   # (Cout, Cmid)
    Cout = w2.shape[0]

    # Fold eval-mode BatchNorm into conv1: scale into weights, rest into one bias (f32).
    eps = 1e-5
    scale = params["bn_gamma"] / jnp.sqrt(params["bn_var"] + eps)
    bias1 = params["bn_beta"] - params["bn_mean"] * scale

    # (Cmid,3,3,Cin) -> pad Cin to Cin_pad -> (Cmid, 9*Cin_pad); K order matches the
    # kernel's tap stacking ((dy,dx) major, channel minor). bf16 for the MXU.
    w1_k = jnp.transpose(w1, (0, 2, 3, 1))
    w1_k = jnp.pad(w1_k, ((0, 0), (0, 0), (0, 0), (0, Cin_pad - Cin)))
    w1_mat = (w1_k.reshape(Cmid, 9 * Cin_pad) * scale[:, None]).astype(jnp.bfloat16)

    # Channel-major flat layout (free reshape), Cin padded, bf16 to halve input DMA.
    x_flat = x_nchw.reshape(N, Cin, HW)
    x_flat = jnp.pad(x_flat, ((0, 0), (0, Cin_pad - Cin), (0, 0))).astype(jnp.bfloat16)

    # Default: whole batch in one grid step (single-TC v5e/v6e pay ~0.35us per step).
    # On v7x pass images_per_step = N//2 to split across both TensorCores.
    NB = N if images_per_step is None else images_per_step
    assert N % NB == 0, (N, NB)

    out_flat = pl.pallas_call(
        functools.partial(def_head_kernel, H=H, W=W),
        out_shape=jax.ShapeDtypeStruct((N, Cout, HW), jnp.float32),
        grid=(N // NB,),
        in_specs=[
            pl.BlockSpec((NB, Cin_pad, HW), lambda b: (b, 0, 0)),
            pl.BlockSpec((Cmid, 9 * Cin_pad), lambda b: (0, 0)),
            pl.BlockSpec((Cmid, 1), lambda b: (0, 0)),
            pl.BlockSpec((Cout, Cmid), lambda b: (0, 0)),
            pl.BlockSpec((Cout, 1), lambda b: (0, 0)),
        ],
        out_specs=pl.BlockSpec((NB, Cout, HW), lambda b: (b, 0, 0)),
        compiler_params=pltpu.CompilerParams(
            dimension_semantics=("parallel",),
        ),
    )(
        x_flat,
        w1_mat,
        bias1.reshape(Cmid, 1).astype(jnp.float32),
        w2.astype(jnp.bfloat16),
        params["b2"].reshape(Cout, 1).astype(jnp.float32),
    )

    return out_flat.reshape(N, Cout, H, W)


# ----------------------------------------------------------------------------
# Pure-JAX f32 reference (correctness check)
# ----------------------------------------------------------------------------
def def_head_reference(x_nchw, params):
    eps = 1e-5
    h = jax.lax.conv_general_dilated(
        x_nchw, params["w1"], window_strides=(1, 1), padding=((1, 1), (1, 1)),
        dimension_numbers=("NCHW", "OIHW", "NCHW"))
    scale = params["bn_gamma"] / jnp.sqrt(params["bn_var"] + eps)
    bias = params["bn_beta"] - params["bn_mean"] * scale
    h = h * scale[None, :, None, None] + bias[None, :, None, None]
    h = jnp.where(h > 0, h, 0.1 * h)
    y = jax.lax.conv_general_dilated(
        h, params["w2"], window_strides=(1, 1), padding=((0, 0), (0, 0)),
        dimension_numbers=("NCHW", "OIHW", "NCHW"))
    return y + params["b2"][None, :, None, None]


# ----------------------------------------------------------------------------
# Deterministic parameter init + smoke test
# ----------------------------------------------------------------------------
def init_params(key, nchannels, nanchors, nclasses):
    mid = 2 * nchannels
    out = nanchors * (5 + nclasses)
    ks = jax.random.split(key, 7)
    return {
        "w1": 0.1 * jax.random.normal(ks[0], (mid, nchannels, 3, 3), jnp.float32),
        "bn_gamma": 1.0 + 0.1 * jax.random.normal(ks[1], (mid,), jnp.float32),
        "bn_beta": 0.1 * jax.random.normal(ks[2], (mid,), jnp.float32),
        "bn_mean": 0.1 * jax.random.normal(ks[3], (mid,), jnp.float32),
        "bn_var": jnp.abs(1.0 + 0.1 * jax.random.normal(ks[4], (mid,), jnp.float32)),
        "w2": 0.1 * jax.random.normal(ks[5], (out, mid, 1, 1), jnp.float32),
        "b2": 0.1 * jax.random.normal(ks[6], (out,), jnp.float32),
    }


if __name__ == "__main__":
    nchannels, nanchors, nclasses = 4, 3, 2
    N, H, W = 2, 16, 16

    key = jax.random.PRNGKey(0)
    kx, kp = jax.random.split(key)
    x = jax.random.normal(kx, (N, nchannels, H, W), jnp.float32)
    params = init_params(kp, nchannels, nanchors, nclasses)

    out = jax.block_until_ready(def_head_forward(x, params))

    expected_shape = (N, nanchors * (5 + nclasses), H, W)
    assert out.shape == expected_shape, (out.shape, expected_shape)

    ref = jax.block_until_ready(def_head_reference(x, params))
    max_err = float(jnp.max(jnp.abs(out - ref)))
    # bf16 MXU operands vs f32 reference -> loosened tolerance.
    assert jnp.allclose(out, ref, atol=5e-2, rtol=5e-2), max_err

    print("KERNEL_OK")
</pallas_src>

<mosaic_0001>
module attributes {stable_mosaic.version = 11 : i64} {
  func.func @def_head_kernel(%arg0: i32, %arg1: memref<2x8x256xbf16, #tpu.memory_space<vmem>>, %arg2: memref<8x72xbf16, #tpu.memory_space<vmem>>, %arg3: memref<8x1xf32, #tpu.memory_space<vmem>>, %arg4: memref<21x8xbf16, #tpu.memory_space<vmem>>, %arg5: memref<21x1xf32, #tpu.memory_space<vmem>>, %arg6: memref<2x21x256xf32, #tpu.memory_space<vmem>>) attributes {dimension_semantics = [#tpu.dimension_semantics<parallel>], iteration_bounds = array<i64: 1>, scalar_prefetch = 0 : i64, scratch_operands = 0 : i64, tpu.core_type = #tpu.core_type<tc>, window_params = [{transform_indices = @transform_0, window_bounds = array<i64: 2, 8, 256>}, {pipeline_mode = #tpu.pipeline_mode<synchronous>, transform_indices = @transform_1, window_bounds = array<i64: 8, 72>}, {pipeline_mode = #tpu.pipeline_mode<synchronous>, transform_indices = @transform_2, window_bounds = array<i64: 8, 1>}, {pipeline_mode = #tpu.pipeline_mode<synchronous>, transform_indices = @transform_3, window_bounds = array<i64: 21, 8>}, {pipeline_mode = #tpu.pipeline_mode<synchronous>, transform_indices = @transform_4, window_bounds = array<i64: 21, 1>}, {transform_indices = @transform_5, window_bounds = array<i64: 2, 21, 256>}]} {
    %0 = tpu.iota {dimensions = array<i32: 1>} : vector<1x256xi32>
    %c16_i32 = arith.constant 16 : i32
    %c0_i32 = arith.constant 0 : i32
    %1 = arith.cmpi eq, %c16_i32, %c0_i32 : i32
    %c1_i32 = arith.constant 1 : i32
    %2 = arith.select %1, %c1_i32, %c16_i32 : i32
    %3 = vector.broadcast %2 : i32 to vector<1x256xi32>
    %4 = arith.remsi %0, %3 : vector<1x256xi32>
    %c0_i32_0 = arith.constant 0 : i32
    %5 = vector.broadcast %c0_i32_0 : i32 to vector<1x256xi32>
    %6 = arith.cmpi ne, %4, %5 : vector<1x256xi32>
    %c0_i32_1 = arith.constant 0 : i32
    %7 = vector.broadcast %c0_i32_1 : i32 to vector<1x256xi32>
    %8 = arith.cmpi slt, %4, %7 : vector<1x256xi32>
    %c0_i32_2 = arith.constant 0 : i32
    %9 = arith.cmpi slt, %2, %c0_i32_2 : i32
    %10 = vector.broadcast %9 : i1 to vector<1x256xi1>
    %11 = vector.broadcast %10 : vector<1x256xi1> to vector<1x256xi1>
    %12 = arith.xori %8, %11 : vector<1x256xi1>
    %13 = arith.andi %12, %6 : vector<1x256xi1>
    %14 = vector.broadcast %2 : i32 to vector<1x256xi32>
    %15 = arith.addi %4, %14 : vector<1x256xi32>
    %16 = arith.select %13, %15, %4 : vector<1x256xi1>, vector<1x256xi32>
    %c16_i32_3 = arith.constant 16 : i32
    %17 = vector.broadcast %c16_i32_3 : i32 to vector<1x256xi32>
    %18 = arith.cmpi sge, %0, %17 : vector<1x256xi32>
    %19 = arith.extui %18 : vector<1x256xi1> to vector<1x256xi32>
    %20 = arith.sitofp %19 : vector<1x256xi32> to vector<1x256xf32>
    %21 = vector.shape_cast %20 : vector<1x256xf32> to vector<1x256xf32>
    %22 = vector.broadcast %21 : vector<1x256xf32> to vector<8x256xf32>
    %c240_i32 = arith.constant 240 : i32
    %23 = vector.broadcast %c240_i32 : i32 to vector<1x256xi32>
    %24 = arith.cmpi slt, %0, %23 : vector<1x256xi32>
    %25 = arith.extui %24 : vector<1x256xi1> to vector<1x256xi32>
    %26 = arith.sitofp %25 : vector<1x256xi32> to vector<1x256xf32>
    %27 = vector.shape_cast %26 : vector<1x256xf32> to vector<1x256xf32>
    %28 = vector.broadcast %27 : vector<1x256xf32> to vector<8x256xf32>
    %c1_i32_4 = arith.constant 1 : i32
    %29 = vector.broadcast %c1_i32_4 : i32 to vector<1x256xi32>
    %30 = arith.cmpi sge, %16, %29 : vector<1x256xi32>
    %31 = arith.extui %30 : vector<1x256xi1> to vector<1x256xi32>
    %32 = arith.sitofp %31 : vector<1x256xi32> to vector<1x256xf32>
    %33 = vector.shape_cast %32 : vector<1x256xf32> to vector<1x256xf32>
    %34 = vector.broadcast %33 : vector<1x256xf32> to vector<8x256xf32>
    %c14_i32 = arith.constant 14 : i32
    %35 = vector.broadcast %c14_i32 : i32 to vector<1x256xi32>
    %36 = arith.cmpi sle, %16, %35 : vector<1x256xi32>
    %37 = arith.extui %36 : vector<1x256xi1> to vector<1x256xi32>
    %38 = arith.sitofp %37 : vector<1x256xi32> to vector<1x256xf32>
    %39 = vector.shape_cast %38 : vector<1x256xf32> to vector<1x256xf32>
    %40 = vector.broadcast %39 : vector<1x256xf32> to vector<8x256xf32>
    %c0 = arith.constant 0 : index
    %c0_5 = arith.constant 0 : index
    %41 = vector.load %arg2[%c0, %c0_5] : memref<8x72xbf16, #tpu.memory_space<vmem>>, vector<8x72xbf16>
    %c0_6 = arith.constant 0 : index
    %c0_7 = arith.constant 0 : index
    %42 = vector.load %arg4[%c0_6, %c0_7] : memref<21x8xbf16, #tpu.memory_space<vmem>>, vector<21x8xbf16>
    %c0_8 = arith.constant 0 : index
    %c0_9 = arith.constant 0 : index
    %43 = vector.load %arg3[%c0_8, %c0_9] : memref<8x1xf32, #tpu.memory_space<vmem>>, vector<8x1xf32>
    %c0_10 = arith.constant 0 : index
    %c0_11 = arith.constant 0 : index
    %44 = vector.load %arg5[%c0_10, %c0_11] : memref<21x1xf32, #tpu.memory_space<vmem>>, vector<21x1xf32>
    %c0_12 = arith.constant 0 : index
    %c0_13 = arith.constant 0 : index
    %c0_14 = arith.constant 0 : index
    %45 = vector.load %arg1[%c0_12, %c0_13, %c0_14] : memref<2x8x256xbf16, #tpu.memory_space<vmem>>, vector<1x8x256xbf16>
    %46 = vector.shape_cast %45 : vector<1x8x256xbf16> to vector<8x256xbf16>
    %47 = arith.extf %46 : vector<8x256xbf16> to vector<8x256xf32>
    %c17_i32 = arith.constant 17 : i32
    %48 = tpu.dynamic_rotate %47 by %c17_i32 dim 1 : vector<8x256xf32>, i32 -> vector<8x256xf32>
    %49 = arith.mulf %48, %22 : vector<8x256xf32>
    %50 = arith.mulf %49, %34 : vector<8x256xf32>
    %c16_i32_15 = arith.constant 16 : i32
    %51 = tpu.dynamic_rotate %47 by %c16_i32_15 dim 1 : vector<8x256xf32>, i32 -> vector<8x256xf32>
    %52 = arith.mulf %51, %22 : vector<8x256xf32>
    %c15_i32 = arith.constant 15 : i32
    %53 = tpu.dynamic_rotate %47 by %c15_i32 dim 1 : vector<8x256xf32>, i32 -> vector<8x256xf32>
    %54 = arith.mulf %53, %22 : vector<8x256xf32>
    %55 = arith.mulf %54, %40 : vector<8x256xf32>
    %c1_i32_16 = arith.constant 1 : i32
    %56 = tpu.dynamic_rotate %47 by %c1_i32_16 dim 1 : vector<8x256xf32>, i32 -> vector<8x256xf32>
    %57 = arith.mulf %56, %34 : vector<8x256xf32>
    %c255_i32 = arith.constant 255 : i32
    %58 = tpu.dynamic_rotate %47 by %c255_i32 dim 1 : vector<8x256xf32>, i32 -> vector<8x256xf32>
    %59 = arith.mulf %58, %40 : vector<8x256xf32>
    %c241_i32 = arith.constant 241 : i32
    %60 = tpu.dynamic_rotate %47 by %c241_i32 dim 1 : vector<8x256xf32>, i32 -> vector<8x256xf32>
    %61 = arith.mulf %60, %28 : vector<8x256xf32>
    %62 = arith.mulf %61, %34 : vector<8x256xf32>
    %c240_i32_17 = arith.constant 240 : i32
    %63 = tpu.dynamic_rotate %47 by %c240_i32_17 dim 1 : vector<8x256xf32>, i32 -> vector<8x256xf32>
    %64 = arith.mulf %63, %28 : vector<8x256xf32>
    %c239_i32 = arith.constant 239 : i32
    %65 = tpu.dynamic_rotate %47 by %c239_i32 dim 1 : vector<8x256xf32>, i32 -> vector<8x256xf32>
    %66 = arith.mulf %65, %28 : vector<8x256xf32>
    %67 = arith.mulf %66, %40 : vector<8x256xf32>
    %68 = tpu.concatenate %50, %52, %55, %57, %47, %59, %62, %64, %67 in 0 : vector<8x256xf32>, vector<8x256xf32>, vector<8x256xf32>, vector<8x256xf32>, vector<8x256xf32>, vector<8x256xf32>, vector<8x256xf32>, vector<8x256xf32>, vector<8x256xf32> -> vector<72x256xf32>
    %69 = arith.truncf %68 : vector<72x256xf32> to vector<72x256xbf16>
    %cst = arith.constant dense<0.000000e+00> : vector<8x256xf32>
    %70 = tpu.matmul %41, %69, %cst {dimension_numbers = #tpu.dot_dimension_numbers<[1], [0], [0], [1], [0, 0, 1, 1], [], []>} : vector<8x72xbf16>, vector<72x256xbf16>, vector<8x256xf32> -> vector<8x256xf32>
    %71 = vector.broadcast %43 : vector<8x1xf32> to vector<8x256xf32>
    %72 = arith.addf %70, %71 : vector<8x256xf32>
    %cst_18 = arith.constant 0.000000e+00 : f32
    %73 = vector.broadcast %cst_18 : f32 to vector<8x256xf32>
    %74 = arith.cmpf ogt, %72, %73 : vector<8x256xf32>
    %cst_19 = arith.constant 1.000000e-01 : f32
    %75 = vector.broadcast %cst_19 : f32 to vector<8x256xf32>
    %76 = arith.mulf %75, %72 : vector<8x256xf32>
    %77 = arith.select %74, %72, %76 : vector<8x256xi1>, vector<8x256xf32>
    %78 = arith.truncf %77 : vector<8x256xf32> to vector<8x256xbf16>
    %cst_20 = arith.constant dense<0.000000e+00> : vector<21x256xf32>
    %79 = tpu.matmul %42, %78, %cst_20 {dimension_numbers = #tpu.dot_dimension_numbers<[1], [0], [0], [1], [0, 0, 1, 1], [], []>} : vector<21x8xbf16>, vector<8x256xbf16>, vector<21x256xf32> -> vector<21x256xf32>
    %80 = vector.broadcast %44 : vector<21x1xf32> to vector<21x256xf32>
    %81 = arith.addf %79, %80 : vector<21x256xf32>
    %c0_21 = arith.constant 0 : index
    %c0_22 = arith.constant 0 : index
    %c0_23 = arith.constant 0 : index
    %82 = vector.load %arg6[%c0_21, %c0_22, %c0_23] : memref<2x21x256xf32, #tpu.memory_space<vmem>>, vector<1x21x256xf32>
    %83 = vector.shape_cast %82 : vector<1x21x256xf32> to vector<21x256xf32>
    %84 = vector.shape_cast %81 : vector<21x256xf32> to vector<1x21x256xf32>
    tpu.vector_store %arg6[%c0_21, %c0_22, %c0_23], %84 {strides = array<i32>} : memref<2x21x256xf32, #tpu.memory_space<vmem>>, vector<1x21x256xf32>,
    %c1 = arith.constant 1 : index
    %c0_24 = arith.constant 0 : index
    %c0_25 = arith.constant 0 : index
    %85 = vector.load %arg1[%c1, %c0_24, %c0_25] : memref<2x8x256xbf16, #tpu.memory_space<vmem>>, vector<1x8x256xbf16>
    %86 = vector.shape_cast %85 : vector<1x8x256xbf16> to vector<8x256xbf16>
    %87 = arith.extf %86 : vector<8x256xbf16> to vector<8x256xf32>
    %c17_i32_26 = arith.constant 17 : i32
    %88 = tpu.dynamic_rotate %87 by %c17_i32_26 dim 1 : vector<8x256xf32>, i32 -> vector<8x256xf32>
    %89 = arith.mulf %88, %22 : vector<8x256xf32>
    %90 = arith.mulf %89, %34 : vector<8x256xf32>
    %c16_i32_27 = arith.constant 16 : i32
    %91 = tpu.dynamic_rotate %87 by %c16_i32_27 dim 1 : vector<8x256xf32>, i32 -> vector<8x256xf32>
    %92 = arith.mulf %91, %22 : vector<8x256xf32>
    %c15_i32_28 = arith.constant 15 : i32
    %93 = tpu.dynamic_rotate %87 by %c15_i32_28 dim 1 : vector<8x256xf32>, i32 -> vector<8x256xf32>
    %94 = arith.mulf %93, %22 : vector<8x256xf32>
    %95 = arith.mulf %94, %40 : vector<8x256xf32>
    %c1_i32_29 = arith.constant 1 : i32
    %96 = tpu.dynamic_rotate %87 by %c1_i32_29 dim 1 : vector<8x256xf32>, i32 -> vector<8x256xf32>
    %97 = arith.mulf %96, %34 : vector<8x256xf32>
    %c255_i32_30 = arith.constant 255 : i32
    %98 = tpu.dynamic_rotate %87 by %c255_i32_30 dim 1 : vector<8x256xf32>, i32 -> vector<8x256xf32>
    %99 = arith.mulf %98, %40 : vector<8x256xf32>
    %c241_i32_31 = arith.constant 241 : i32
    %100 = tpu.dynamic_rotate %87 by %c241_i32_31 dim 1 : vector<8x256xf32>, i32 -> vector<8x256xf32>
    %101 = arith.mulf %100, %28 : vector<8x256xf32>
    %102 = arith.mulf %101, %34 : vector<8x256xf32>
    %c240_i32_32 = arith.constant 240 : i32
    %103 = tpu.dynamic_rotate %87 by %c240_i32_32 dim 1 : vector<8x256xf32>, i32 -> vector<8x256xf32>
    %104 = arith.mulf %103, %28 : vector<8x256xf32>
    %c239_i32_33 = arith.constant 239 : i32
    %105 = tpu.dynamic_rotate %87 by %c239_i32_33 dim 1 : vector<8x256xf32>, i32 -> vector<8x256xf32>
    %106 = arith.mulf %105, %28 : vector<8x256xf32>
    %107 = arith.mulf %106, %40 : vector<8x256xf32>
    %108 = tpu.concatenate %90, %92, %95, %97, %87, %99, %102, %104, %107 in 0 : vector<8x256xf32>, vector<8x256xf32>, vector<8x256xf32>, vector<8x256xf32>, vector<8x256xf32>, vector<8x256xf32>, vector<8x256xf32>, vector<8x256xf32>, vector<8x256xf32> -> vector<72x256xf32>
    %109 = arith.truncf %108 : vector<72x256xf32> to vector<72x256xbf16>
    %cst_34 = arith.constant dense<0.000000e+00> : vector<8x256xf32>
    %110 = tpu.matmul %41, %109, %cst_34 {dimension_numbers = #tpu.dot_dimension_numbers<[1], [0], [0], [1], [0, 0, 1, 1], [], []>} : vector<8x72xbf16>, vector<72x256xbf16>, vector<8x256xf32> -> vector<8x256xf32>
    %111 = vector.broadcast %43 : vector<8x1xf32> to vector<8x256xf32>
    %112 = arith.addf %110, %111 : vector<8x256xf32>
    %cst_35 = arith.constant 0.000000e+00 : f32
    %113 = vector.broadcast %cst_35 : f32 to vector<8x256xf32>
    %114 = arith.cmpf ogt, %112, %113 : vector<8x256xf32>
    %cst_36 = arith.constant 1.000000e-01 : f32
    %115 = vector.broadcast %cst_36 : f32 to vector<8x256xf32>
    %116 = arith.mulf %115, %112 : vector<8x256xf32>
    %117 = arith.select %114, %112, %116 : vector<8x256xi1>, vector<8x256xf32>
    %118 = arith.truncf %117 : vector<8x256xf32> to vector<8x256xbf16>
    %cst_37 = arith.constant dense<0.000000e+00> : vector<21x256xf32>
    %119 = tpu.matmul %42, %118, %cst_37 {dimension_numbers = #tpu.dot_dimension_numbers<[1], [0], [0], [1], [0, 0, 1, 1], [], []>} : vector<21x8xbf16>, vector<8x256xbf16>, vector<21x256xf32> -> vector<21x256xf32>
    %120 = vector.broadcast %44 : vector<21x1xf32> to vector<21x256xf32>
    %121 = arith.addf %119, %120 : vector<21x256xf32>
    %c1_38 = arith.constant 1 : index
    %c0_39 = arith.constant 0 : index
    %c0_40 = arith.constant 0 : index
    %122 = vector.load %arg6[%c1_38, %c0_39, %c0_40] : memref<2x21x256xf32, #tpu.memory_space<vmem>>, vector<1x21x256xf32>
    %123 = vector.shape_cast %122 : vector<1x21x256xf32> to vector<21x256xf32>
    %124 = vector.shape_cast %121 : vector<21x256xf32> to vector<1x21x256xf32>
    tpu.vector_store %arg6[%c1_38, %c0_39, %c0_40], %124 {strides = array<i32>} : memref<2x21x256xf32, #tpu.memory_space<vmem>>, vector<1x21x256xf32>,
    return
  }
  func.func @transform_0(%arg0: i32) -> (i32, i32, i32) {
    %c0_i32 = arith.constant 0 : i32
    %c0_i32_0 = arith.constant 0 : i32
    %c0_i32_1 = arith.constant 0 : i32
    return %arg0, %c0_i32, %c0_i32_0 : i32, i32, i32
  }
  func.func @transform_1(%arg0: i32) -> (i32, i32) {
    %c0_i32 = arith.constant 0 : i32
    %c0_i32_0 = arith.constant 0 : i32
    %c0_i32_1 = arith.constant 0 : i32
    return %c0_i32, %c0_i32_0 : i32, i32
  }
  func.func @transform_2(%arg0: i32) -> (i32, i32) {
    %c0_i32 = arith.constant 0 : i32
    %c0_i32_0 = arith.constant 0 : i32
    %c0_i32_1 = arith.constant 0 : i32
    return %c0_i32, %c0_i32_0 : i32, i32
  }
  func.func @transform_3(%arg0: i32) -> (i32, i32) {
    %c0_i32 = arith.constant 0 : i32
    %c0_i32_0 = arith.constant 0 : i32
    %c0_i32_1 = arith.constant 0 : i32
    return %c0_i32, %c0_i32_0 : i32, i32
  }
  func.func @transform_4(%arg0: i32) -> (i32, i32) {
    %c0_i32 = arith.constant 0 : i32
    %c0_i32_0 = arith.constant 0 : i32
    %c0_i32_1 = arith.constant 0 : i32
    return %c0_i32, %c0_i32_0 : i32, i32
  }
  func.func @transform_5(%arg0: i32) -> (i32, i32, i32) {
    %c0_i32 = arith.constant 0 : i32
    %c0_i32_0 = arith.constant 0 : i32
    %c0_i32_1 = arith.constant 0 : i32
    return %arg0, %c0_i32, %c0_i32_0 : i32, i32, i32
  }
}

</mosaic_0001>

<bundles_post_ra>
// kernel: tpu_custom_call.1
= control target key start
LH: loop header
LB: loop body
LE: loop exit
PB: predicated region body
PF: predicated region fallthrough
CT: control target
= control target key end

     0   :  { %s603_s20 = smov 111   ;;  %s604_s21 = smov 112   ;;  %v21_v4 = vlaneseq  ;;  %v611_v13 = vmov 0.0   ;;  %vm182_vm6 = vcmask 1043456   ;;  %v612_v24 = vmov 0   ;;  %s943_s0 = inlined_call_operand.vmem [shape: bf16[2,8,256], index: 0, kind: input, shape index: {}]   ;;  %s944_s2 = inlined_call_operand.vmem [shape: f32[8,1], index: 2, kind: input, shape index: {}]   ;;  %s945_s4 = inlined_call_operand.vmem [shape: f32[21,1], index: 4, kind: input, shape index: {}]   ;;  %s946_s1 = inlined_call_operand.vmem [shape: bf16[8,72], index: 1, kind: input, shape index: {}]   ;;  %s947_s3 = inlined_call_operand.vmem [shape: bf16[21,8], index: 3, kind: input, shape index: {}]   ;;  %s948_s5 = inlined_call_operand.vmem [shape: f32[2,21,256], index: 5, kind: output, shape index: {}]  }
   0x1   :  { %v646_v0 = vld [vmem:[%s943_s0] sm:$0xff]  ;;  %s605_s22 = smov 15   ;;  %s606_s23 = smov 113   ;;  %v672_v10 = vld [vmem:[%s943_s0 + $0x8] sm:$0xff]  ;;  %560 = vset.pattern.permute.xlu2 %v612_v24  ;;  %601 = vset.pattern.permute.xlu0 %v612_v24  ;;  %vm178_vm15 = vcmask 588800  }
   0x2   :  { %v81_v1 = vunpack.c.l.bf16 %v646_v0  ;;  %v82_v2 = vunpack.c.h.bf16 %v646_v0  ;;  %s607_s24 = smov 127   ;;  %s608_s25 = smov 1   ;;  %v662_v5 = vand.u32 127, %v21_v4  ;;  %v76_v21 = vld [vmem:[%s944_s2] sm:$0xff]  ;;  %v303_v25 = vunpack.c.l.bf16 %v672_v10  ;;  %602 = vset.pattern.permute.xlu1 %v612_v24 }
   0x3   :  { %s609_s26 = smov 17   ;;  %s610_s27 = smov 16   ;;  %v304_v26 = vunpack.c.h.bf16 %v672_v10 }
   0x4   :  { %v520_v3 = vpack.i.bf16 %v82_v2, %v81_v1  ;;  %v23_v6 = vadd.s32 128, %v662_v5  ;;  %v28_v7 = vand.u32 15, %v662_v5  ;;  %vm107_vm3 = vcmp.lt.s32.totalorder %v662_v5, 15 }
   0x5   :  { %vm136_vm4 = vcmp.lt.s32.totalorder %v662_v5, 113  ;;  %vm156_vm5 = vcmp.lt.s32.totalorder %v662_v5, 111  ;;  %vm147_vm8 = vcmp.lt.s32.totalorder %v662_v5, 112  ;;  %vm48_vm10 = vcmp.ge.s32.totalorder %v662_v5, 16 }
   0x6   :  { %521 = vrot.lane.b32.xlu0 %v520_v3, %s603_s20  ;;  %531 = vrot.lane.b32.xlu1 %v520_v3, %s604_s21  ;;  %v35_v8 = vand.u32 15, %v23_v6  ;;  %vm66_vm0 = vcmp.le.s32.totalorder %v28_v7, 14  ;;  %vm55_vm1 = vcmp.lt.s32.totalorder %v23_v6, 240  ;;  %vm60_vm7 = vcmp.ge.s32.totalorder %v28_v7, 1 }
   0x7   :  { %541 = vrot.lane.b32.xlu2 %v520_v3, %s605_s22  ;;  %v677_v14 = vsel %vm66_vm0, 1.0, %v611_v13  ;;  %v680_v15 = vsel %vm55_vm1, 1.0, %v611_v13  ;;  %v705_v31 = vsel %vm60_vm7, 1.0, %v611_v13  ;;  %v711_v32 = vpack.i.bf16 %v304_v26, %v303_v25 }
   0x8   :  { %vm67_vm2 = vcmp.le.s32.totalorder %v35_v8, 14  ;;  %vm61_vm9 = vcmp.ge.s32.totalorder %v35_v8, 1  ;;  %vm127_vm11 = vcmp.lt.s32.totalorder %v662_v5, 127  ;;  %v719_v39 = vsel %vm48_vm10, 1.0, %v611_v13 }
   0x9   :  { %v682_v16 = vsel %vm67_vm2, 1.0, %v611_v13  ;;  %v716_v38 = vsel %vm61_vm9, 1.0, %v611_v13  ;;  %vm118_vm12 = vcmp.lt.s32.totalorder %v662_v5, 1  ;;  %vm87_vm13 = vcmp.lt.s32.totalorder %v662_v5, 17 }
   0xa   :  { %vm98_vm14 = vcmp.lt.s32.totalorder %v662_v5, 16  ;;  %vm246_vm2 = vcmask 64512  }
   0xe   :  { %526 = vrot.lane.b32.xlu0 %v520_v3, %s606_s23  ;;  %536 = vrot.lane.b32.xlu1 %v520_v3, %s607_s24 }
   0xf   :  { %546 = vrot.lane.b32.xlu2 %v520_v3, %s608_s25 }
  0x16   :  { %551 = vrot.lane.b32.xlu0 %v520_v3, %s609_s26  ;;  %556 = vrot.lane.b32.xlu1 %v520_v3, %s610_s27 }
  0x17   :  { %175 = vperm.xlu2 %560, %v76_v21  }
  0x1e   :  { %562 = vrot.lane.b32.xlu0 %v711_v32, %s603_s20  ;;  %567 = vrot.lane.b32.xlu1 %v711_v32, %s606_s23 }
  0x1f   :  { %572 = vrot.lane.b32.xlu2 %v711_v32, %s604_s21 }
  0x26   :  { %577 = vrot.lane.b32.xlu0 %v711_v32, %s607_s24  ;;  %582 = vrot.lane.b32.xlu1 %v711_v32, %s605_s22 }
  0x27   :  { %587 = vrot.lane.b32.xlu2 %v711_v32, %s608_s25 }
  0x2e   :  { %592 = vrot.lane.b32.xlu0 %v711_v32, %s609_s26  ;;  %597 = vrot.lane.b32.xlu1 %v711_v32, %s610_s27 }
  0x61   :  { %v666_v9 = vpop.permute.xlu2 %541 }
  0x62   :  { %v544_v19 = vunpack.i.h.bf16 %v666_v9  ;;  %v543_v20 = vunpack.i.l.bf16 %v666_v9 }
  0x64   :  { %v109_v30 = vsel %vm107_vm3, %v544_v19, %v543_v20  ;;  %v108_v4 = vsel %vm107_vm3, %v543_v20, %v544_v19 }
  0x65   :  { %v110_v59 = vmul.f32 %v719_v39, %v109_v30 }
  0x67   :  { %v112_v20 = vmul.f32 %v677_v14, %v110_v59 }
  0x69   :  { %v547_v28 = vpop.permute.xlu2 %546 }
  0x6a   :  { %v549_v37 = vunpack.i.h.bf16 %v547_v28  ;;  %v548_v42 = vunpack.i.l.bf16 %v547_v28 }
  0x6c   :  { %v120_v3 = vsel %vm118_vm12, %v549_v37, %v548_v42  ;;  %v119_v6 = vsel %vm118_vm12, %v548_v42, %v549_v37 }
  0x6d   :  { %v121_v21 = vmul.f32 %v705_v31, %v120_v3  ;;  %v122_v24 = vmul.f32 %v716_v38, %v119_v6 }
  0x6f   :  { %v165_v28 = vpack.c.bf16 %v121_v21, %v112_v20 }
  0x71   :  { %v803_v32 = vpop.permute.xlu2 %175 }
  0x78   :  { %v522_v11 = vpop.permute.xlu0 %521  ;;  %v674_v12 = vpop.permute.xlu1 %531 }
  0x79   :  { %v524_v17 = vunpack.i.h.bf16 %v522_v11  ;;  %v523_v18 = vunpack.i.l.bf16 %v522_v11  ;;  %v534_v33 = vunpack.i.h.bf16 %v674_v12  ;;  %v533_v34 = vunpack.i.l.bf16 %v674_v12 }
  0x7b   :  { %v157_v22 = vsel %vm156_vm5, %v523_v18, %v524_v17  ;;  %v158_v23 = vsel %vm156_vm5, %v524_v17, %v523_v18  ;;  %v149_v50 = vsel %vm147_vm8, %v534_v33, %v533_v34  ;;  %v148_v58 = vsel %vm147_vm8, %v533_v34, %v534_v33 }
  0x7c   :  { %v161_v27 = vmul.f32 %v677_v14, %v157_v22  ;;  %v160_v29 = vmul.f32 %v680_v15, %v158_v23  ;;  %v151_v62 = vmul.f32 %v680_v15, %v149_v50  ;;  %v113_v22 = vmul.f32 %v682_v16, %v108_v4 }
  0x7e   :  { %v171_v35 = vpack.c.bf16 %v161_v27, %v161_v27  ;;  %v162_v36 = vmul.f32 %v682_v16, %v160_v29  ;;  %v166_v30 = vpack.c.bf16 %v122_v24, %v113_v22 }
  0x80   :  { %v527_v40 = vpop.permute.xlu0 %526  ;;  %v184_v41 = vsel %vm182_vm6, %v171_v35, 0  ;;  %v172_v43 = vpack.c.bf16 %v162_v36, %v162_v36  ;;  %v537_v44 = vpop.permute.xlu1 %536  ;;  %v77_v36 = vld [vmem:[%s945_s4] sm:$0xff] }
  0x81   :  { %v529_v45 = vunpack.i.h.bf16 %v527_v40  ;;  %v528_v46 = vunpack.i.l.bf16 %v527_v40  ;;  %192 = vmatpush.bf16.msra.mxu0 %v184_v41  ;;  %v539_v47 = vunpack.i.h.bf16 %v537_v44  ;;  %v538_v48 = vunpack.i.l.bf16 %v537_v44  ;;  %v797_v40 = vld [vmem:[%s946_s1] sm:$0xf]  ;;  %225 = vperm.xlu2 %560, %v77_v36  }
  0x82   :  { %v187_v49 = vsel %vm182_vm6, %v172_v43, 0  ;;  %v573_v43 = vpop.permute.xlu2 %572  ;;  %v844_v36 = vld [vmem:[%s947_s3] sm:$0xff] }
  0x83   :  { %v138_v51 = vsel %vm136_vm4, %v529_v45, %v528_v46  ;;  %205 = vmatpush.bf16.msra.mxu1 %v187_v49  ;;  %v137_v52 = vsel %vm136_vm4, %v528_v46, %v529_v45  ;;  %v128_v53 = vsel %vm127_vm11, %v538_v48, %v539_v47  ;;  %v129_v54 = vsel %vm127_vm11, %v539_v47, %v538_v48 }
  0x84   :  { %v141_v55 = vmul.f32 %v705_v31, %v137_v52  ;;  %v140_v56 = vmul.f32 %v680_v15, %v138_v51  ;;  %v130_v57 = vmul.f32 %v677_v14, %v128_v53  ;;  %v131_v63 = vmul.f32 %v682_v16, %v129_v54  ;;  %v78_v54 = vld [vmem:[%s945_s4 + $0x8] sm:$0xff] }
  0x85   :  { %230 = vperm.xlu0 %601, %v78_v54  }
  0x86   :  { %v169_v60 = vpack.c.bf16 %v148_v58, %v141_v55  ;;  %v142_v61 = vmul.f32 %v716_v38, %v140_v56  ;;  %v167_v12 = vpack.c.bf16 %v130_v57, %v81_v1  ;;  %v168_v19 = vpack.c.bf16 %v131_v63, %v82_v2 }
  0x87   :  { %v575_v56 = vunpack.i.h.bf16 %v573_v43  ;;  %v574_v57 = vunpack.i.l.bf16 %v573_v43 }
  0x88   :  { %193 = vmatpush.bf16.msra.mxu0 %v169_v60  ;;  %v552_v7 = vpop.permute.xlu0 %551  ;;  %v170_v8 = vpack.c.bf16 %v151_v62, %v142_v61  ;;  %v557_v11 = vpop.permute.xlu1 %556 }
  0x89   :  { %v554_v9 = vunpack.i.h.bf16 %v552_v7  ;;  %v553_v13 = vunpack.i.l.bf16 %v552_v7  ;;  %v559_v17 = vunpack.i.h.bf16 %v557_v11  ;;  %v558_v18 = vunpack.i.l.bf16 %v557_v11 }
  0x8a   :  { %206 = vmatpush.bf16.msra.mxu1 %v170_v8  ;;  %v816_v55 = vpop.permute.xlu2 %587  ;;  %v363_v8 = vsel %vm147_vm8, %v574_v57, %v575_v56 }
  0x8b   :  { %v89_v23 = vsel %vm87_vm13, %v554_v9, %v553_v13  ;;  %v100_v1 = vsel %vm98_vm14, %v559_v17, %v558_v18  ;;  %v88_v2 = vsel %vm87_vm13, %v553_v13, %v554_v9  ;;  %v99_v35 = vsel %vm98_vm14, %v558_v18, %v559_v17 }
  0x8c   :  { %194 = vmatpush.bf16.msra.mxu0 %v167_v12  ;;  %v90_v27 = vmul.f32 %v719_v39, %v89_v23  ;;  %v101_v0 = vmul.f32 %v719_v39, %v100_v1  ;;  %v93_v34 = vmul.f32 %v716_v38, %v88_v2  ;;  %v590_v58 = vunpack.i.h.bf16 %v816_v55 }
  0x8d   :  { %v589_v60 = vunpack.i.l.bf16 %v816_v55 }
  0x8e   :  { %207 = vmatpush.bf16.msra.mxu1 %v168_v19  ;;  %v92_v29 = vmul.f32 %v705_v31, %v90_v27  ;;  %v164_v37 = vpack.c.bf16 %v99_v35, %v93_v34  ;;  %v364_v19 = vsel %vm147_vm8, %v575_v56, %v574_v57 }
  0x8f   :  { %v337_v57 = vsel %vm118_vm12, %v589_v60, %v590_v58 }
  0x90   :  { %195 = vmatpush.bf16.msra.mxu0 %v165_v28  ;;  %v163_v33 = vpack.c.bf16 %v101_v0, %v92_v29  ;;  %v563_v41 = vpop.permute.xlu0 %562  ;;  %v568_v42 = vpop.permute.xlu1 %567 }
  0x91   :  { %v565_v44 = vunpack.i.h.bf16 %v563_v41  ;;  %v564_v45 = vunpack.i.l.bf16 %v563_v41  ;;  %v570_v49 = vunpack.i.h.bf16 %v568_v42  ;;  %v569_v50 = vunpack.i.l.bf16 %v568_v42 }
  0x92   :  { %208 = vmatpush.bf16.msra.mxu1 %v166_v30  ;;  %v366_v41 = vmul.f32 %v680_v15, %v364_v19 }
  0x93   :  { %v372_v47 = vsel %vm156_vm5, %v565_v44, %v564_v45  ;;  %v371_v48 = vsel %vm156_vm5, %v564_v45, %v565_v44  ;;  %v354_v62 = vsel %vm136_vm4, %v570_v49, %v569_v50  ;;  %v353_v7 = vsel %vm136_vm4, %v569_v50, %v570_v49 }
  0x94   :  { %196 = vmatpush.bf16.msra.mxu0 %v163_v33  ;;  %v374_v51 = vmul.f32 %v680_v15, %v372_v47  ;;  %v375_v52 = vmul.f32 %v677_v14, %v371_v48  ;;  %v356_v18 = vmul.f32 %v680_v15, %v354_v62  ;;  %v357_v27 = vmul.f32 %v705_v31, %v353_v7 }
  0x96   :  { %209 = vmatpush.bf16.msra.mxu1 %v164_v37  ;;  %v376_v63 = vmul.f32 %v682_v16, %v374_v51  ;;  %v385_v4 = vpack.c.bf16 %v375_v52, %v375_v52  ;;  %v358_v37 = vmul.f32 %v716_v38, %v356_v18  ;;  %v383_v48 = vpack.c.bf16 %v363_v8, %v357_v27 }
  0x97   :  { %486 = vmatmul.msk.bf16.vlgmr.msra.gmra.mxu0 %vm178_vm15, %v797_v40  ;;  %v338_v52 = vsel %vm118_vm12, %v590_v58, %v589_v60 }
  0x98   :  { %v578_v46 = vpop.permute.xlu0 %577  ;;  %v811_v53 = vpop.permute.xlu1 %582  ;;  %v386_v23 = vpack.c.bf16 %v376_v63, %v376_v63  ;;  %v388_v24 = vsel %vm182_vm6, %v385_v4, 0 }
  0x99   :  { %487 = vmatmul.msk.bf16.vlgmr.msra.gmra.mxu1 %vm178_vm15, %v797_v40  ;;  %v585_v6 = vunpack.i.h.bf16 %v811_v53  ;;  %v584_v9 = vunpack.i.l.bf16 %v811_v53  ;;  %v580_v13 = vunpack.i.h.bf16 %v578_v46  ;;  %v579_v17 = vunpack.i.l.bf16 %v578_v46 }
  0x9a   :  { %v391_v43 = vsel %vm182_vm6, %v386_v23, 0  ;;  %v384_v53 = vpack.c.bf16 %v366_v41, %v358_v37 }
  0x9b   :  { %v345_v0 = vsel %vm127_vm11, %v579_v17, %v580_v13  ;;  %v328_v28 = vsel %vm107_vm3, %v585_v6, %v584_v9  ;;  %v346_v44 = vsel %vm127_vm11, %v580_v13, %v579_v17  ;;  %v327_v56 = vsel %vm107_vm3, %v584_v9, %v585_v6 }
  0x9c   :  { %v347_v45 = vmul.f32 %v677_v14, %v345_v0  ;;  %v329_v49 = vmul.f32 %v719_v39, %v328_v28  ;;  %v348_v54 = vmul.f32 %v682_v16, %v346_v44  ;;  %v332_v60 = vmul.f32 %v682_v16, %v327_v56 }
  0x9e   :  { %v381_v55 = vpack.c.bf16 %v347_v45, %v303_v25  ;;  %v79_v25 = vld [vmem:[%s945_s4 + $0x10] sm:$0x1f]  ;;  %v382_v58 = vpack.c.bf16 %v348_v54, %v304_v26 }
  0x9f   :  { %235 = vperm.xlu1 %602, %v79_v25  }
  0xa0   :  { %v593_v20 = vpop.permute.xlu0 %592  ;;  %v598_v42 = vpop.permute.xlu1 %597 }
  0xa1   :  { %v595_v29 = vunpack.i.h.bf16 %v593_v20  ;;  %v594_v30 = vunpack.i.l.bf16 %v593_v20  ;;  %v600_v50 = vunpack.i.h.bf16 %v598_v42  ;;  %v599_v51 = vunpack.i.l.bf16 %v598_v42 }
  0xa3   :  { %v310_v15 = vsel %vm87_vm13, %v595_v29, %v594_v30  ;;  %v320_v63 = vsel %vm98_vm14, %v600_v50, %v599_v51  ;;  %v309_v4 = vsel %vm87_vm13, %v594_v30, %v595_v29  ;;  %v319_v26 = vsel %vm98_vm14, %v599_v51, %v600_v50 }
  0xa4   :  { %v311_v62 = vmul.f32 %v719_v39, %v310_v15  ;;  %v321_v8 = vmul.f32 %v719_v39, %v320_v63  ;;  %v314_v16 = vmul.f32 %v716_v38, %v309_v4 }
  0xa6   :  { %v313_v7 = vmul.f32 %v705_v31, %v311_v62  ;;  %v378_v13 = vpack.c.bf16 %v319_v26, %v314_v16 }
  0xf7   :  { %v231_v18 = vpop.permute.xlu0 %230 }
 0x114   :  { %v198_v59 = vpop.f32.mrf.mxu0 }
 0x115   :  { %v199_v61 = vadd.f32 %v198_v59, %v803_v32  ;;  %v331_v59 = vmul.f32 %v677_v14, %v329_v49  ;;  %v340_v14 = vmul.f32 %v716_v38, %v337_v57 }
 0x116   :  { %v211_v3 = vpop.f32.mrf.mxu1 }
 0x117   :  { %v217_v11 = vmul.f32 0.1, %v199_v61  ;;  %v212_v12 = vadd.f32 %v211_v3, %v803_v32  ;;  %vm215_vm0 = vcmp.gt.f32.partialorder %v199_v61, 0.0  ;;  %v75_v3 = vld [vmem:[%s947_s3 + $0x8] sm:$0x7]  ;;  %v380_v10 = vpack.c.bf16 %v340_v14, %v332_v60 }
 0x119   :  { %v218_v21 = vmul.f32 0.1, %v212_v12  ;;  %v219_v22 = vsel %vm215_vm0, %v199_v61, %v217_v11  ;;  %vm216_vm1 = vcmp.gt.f32.partialorder %v212_v12, 0.0  ;;  %v339_v61 = vmul.f32 %v705_v31, %v338_v52  ;;  %v226_v31 = vpop.permute.xlu2 %225 }
 0x11a   :  { %v221_v1 = vpack.c.bf16 %v219_v22, %v219_v22  ;;  %v243_v11 = vunpack.c.l.b16 %v75_v3  ;;  %v236_v22 = vpop.permute.xlu1 %235 }
 0x11b   :  { %v220_v2 = vsel %vm216_vm1, %v212_v12, %v218_v21  ;;  %v379_v6 = vpack.c.bf16 %v339_v61, %v331_v59  ;;  %v377_v12 = vpack.c.bf16 %v321_v8, %v313_v7 }
 0x11c   :  { %v200_v33 = vpop.f32.mrf.mxu0  ;;  %v254_v34 = vsel %vm182_vm6, %v221_v1, 0  ;;  %v222_v35 = vpack.c.bf16 %v220_v2, %v220_v2  ;;  %v245_v9 = vpack.c.b16 %v243_v11, %v243_v11 }
 0x11d   :  { %266 = vmatpush.bf16.msra.mxu2 %v254_v34 }
 0x11e   :  { %v213_v46 = vpop.f32.mrf.mxu1  ;;  %v257_v47 = vsel %vm182_vm6, %v222_v35, 0 }
 0x11f   :  { %284 = vmatpush.bf16.msra.mxu3 %v257_v47 }
 0x120   :  { %492 = vmatmul.msk.bf16.vlgmr.msra.gmra.mxu2 %vm246_vm2, %v844_v36 }
 0x121   :  { %396 = vmatpush.bf16.msrb.mxu2 %v388_v24 }
 0x122   :  { %494 = vmatmul.msk.bf16.vlgmr.msra.gmra.mxu3 %vm246_vm2, %v844_v36 }
 0x123   :  { %409 = vmatpush.bf16.msrb.mxu3 %v391_v43 }
 0x125   :  { %397 = vmatpush.bf16.msrb.mxu2 %v383_v48 }
 0x127   :  { %410 = vmatpush.bf16.msrb.mxu3 %v384_v53 }
 0x129   :  { %398 = vmatpush.bf16.msrb.mxu2 %v381_v55 }
 0x12b   :  { %411 = vmatpush.bf16.msrb.mxu3 %v382_v58 }
 0x12d   :  { %399 = vmatpush.bf16.msrb.mxu2 %v379_v6 }
 0x12f   :  { %412 = vmatpush.bf16.msrb.mxu3 %v380_v10 }
 0x130   :  { %493 = vmatmul.msk.bf16.gmra.mxu2 %vm246_vm2, %v245_v9 }
 0x131   :  { %400 = vmatpush.bf16.msrb.mxu2 %v377_v12 }
 0x132   :  { %495 = vmatmul.msk.bf16.gmra.mxu3 %vm246_vm2, %v245_v9 }
 0x133   :  { %413 = vmatpush.bf16.msrb.mxu3 %v378_v13 }
 0x140   :  { %497 = vmatmul.msk.bf16.vlgmr.msrb.gmra.mxu2 %vm178_vm15, %v797_v40 }
 0x142   :  { %498 = vmatmul.msk.bf16.vlgmr.msrb.gmra.mxu3 %vm178_vm15, %v797_v40 }
 0x1a3   :  { %v268_v5 = vpop.f32.mrf.mxu2 }
 0x1a4   :  { %v269_v38 = vadd.f32 %v268_v5, %v226_v31 }
 0x1a5   :  { %v286_v39 = vpop.f32.mrf.mxu3 }
 0x1a6   :  { %295 = vst [vmem:[%s948_s5] sm:$0xff] %v269_v38  ;;  %v287_v17 = vadd.f32 %v286_v39, %v226_v31 }
 0x1a8   :  { %296 = vst [vmem:[%s948_s5 + $0x8] sm:$0xff] %v287_v17 }
 0x1ab   :  { %v270_v19 = vpop.f32.mrf.mxu2 }
 0x1ac   :  { %v271_v20 = vadd.f32 %v270_v19, %v231_v18 }
 0x1ad   :  { %v288_v21 = vpop.f32.mrf.mxu3 }
 0x1ae   :  { %297 = vst [vmem:[%s948_s5 + $0x10] sm:$0xff] %v271_v20  ;;  %v289_v40 = vadd.f32 %v288_v21, %v231_v18 }
 0x1b0   :  { %298 = vst [vmem:[%s948_s5 + $0x18] sm:$0xff] %v289_v40 }
 0x1b3   :  { %v273_v23 = vpop.f32.mrf.mxu2 }
 0x1b4   :  { %v274_v1 = vadd.f32 %v273_v23, %v236_v22 }
 0x1b5   :  { %v291_v24 = vpop.f32.mrf.mxu3 }
 0x1b6   :  { %299 = vst [vmem:[%s948_s5 + $0x20] sm:$0x1f] %v274_v1  ;;  %v292_v27 = vadd.f32 %v291_v24, %v236_v22 }
 0x1b8   :  { %300 = vst [vmem:[%s948_s5 + $0x28] sm:$0x1f] %v292_v27 }
 0x1bb   :  { %v275_v0 = vpop.f32.mrf.mxu2 }
 0x1bd   :  { %v293_v2 = vpop.f32.mrf.mxu3 }
 0x1c3   :  { %v402_v28 = vpop.f32.mrf.mxu2 }
 0x1c4   :  { %v403_v29 = vadd.f32 %v402_v28, %v803_v32 }
 0x1c5   :  { %v415_v30 = vpop.f32.mrf.mxu3 }
 0x1c6   :  { %v421_v33 = vmul.f32 0.1, %v403_v29  ;;  %v416_v34 = vadd.f32 %v415_v30, %v803_v32  ;;  %vm419_vm3 = vcmp.gt.f32.partialorder %v403_v29, 0.0 }
 0x1c8   :  { %v422_v35 = vmul.f32 0.1, %v416_v34  ;;  %v423_v37 = vsel %vm419_vm3, %v403_v29, %v421_v33  ;;  %vm420_vm4 = vcmp.gt.f32.partialorder %v416_v34, 0.0 }
 0x1c9   :  { %v425_v41 = vpack.c.bf16 %v423_v37, %v423_v37 }
 0x1ca   :  { %v424_v42 = vsel %vm420_vm4, %v416_v34, %v422_v35 }
 0x1cb   :  { %v404_v43 = vpop.f32.mrf.mxu2  ;;  %v428_v44 = vsel %vm182_vm6, %v425_v41, 0  ;;  %v426_v45 = vpack.c.bf16 %v424_v42, %v424_v42 }
 0x1cc   :  { %440 = vmatpush.bf16.msrb.mxu0 %v428_v44 }
 0x1cd   :  { %v417_v46 = vpop.f32.mrf.mxu3  ;;  %v431_v47 = vsel %vm182_vm6, %v426_v45, 0 }
 0x1ce   :  { %458 = vmatpush.bf16.msrb.mxu1 %v431_v47 }
 0x1cf   :  { %499 = vmatmul.msk.bf16.vlgmr.msrb.gmra.mxu0 %vm246_vm2, %v844_v36 }
 0x1d1   :  { %501 = vmatmul.msk.bf16.vlgmr.msrb.gmra.mxu1 %vm246_vm2, %v844_v36 }
 0x1df   :  { %500 = vmatmul.msk.bf16.gmra.mxu0 %vm246_vm2, %v245_v9 }
 0x1e1   :  { %502 = vmatmul.msk.bf16.gmra.mxu1 %vm246_vm2, %v245_v9 }
 0x24c   :  { %v442_v32 = vpop.f32.mrf.mxu0 }
 0x24d   :  { %v443_v48 = vadd.f32 %v442_v32, %v226_v31 }
 0x24e   :  { %v460_v49 = vpop.f32.mrf.mxu1 }
 0x24f   :  { %503 = vst [vmem:[%s948_s5 + $0x30] sm:$0xff] %v443_v48  ;;  %v461_v15 = vadd.f32 %v460_v49, %v226_v31 }
 0x251   :  { %504 = vst [vmem:[%s948_s5 + $0x38] sm:$0xff] %v461_v15 }
 0x254   :  { %v444_v50 = vpop.f32.mrf.mxu0 }
 0x255   :  { %v445_v51 = vadd.f32 %v444_v50, %v231_v18 }
 0x256   :  { %v462_v52 = vpop.f32.mrf.mxu1 }
 0x257   :  { %505 = vst [vmem:[%s948_s5 + $0x40] sm:$0xff] %v445_v51  ;;  %v463_v36 = vadd.f32 %v462_v52, %v231_v18 }
 0x259   :  { %506 = vst [vmem:[%s948_s5 + $0x48] sm:$0xff] %v463_v36 }
 0x25c   :  { %v447_v53 = vpop.f32.mrf.mxu0 }
 0x25d   :  { %v448_v54 = vadd.f32 %v447_v53, %v236_v22 }
 0x25e   :  { %v465_v55 = vpop.f32.mrf.mxu1 }
 0x25f   :  { %507 = vst [vmem:[%s948_s5 + $0x50] sm:$0x1f] %v448_v54  ;;  %v466_v56 = vadd.f32 %v465_v55, %v236_v22 }
 0x261   :  { %508 = vst [vmem:[%s948_s5 + $0x58] sm:$0x1f] %v466_v56 }
 0x264   :  { %v449_v57 = vpop.f32.mrf.mxu0 }
 0x266   :  { %v467_v59 = vpop.f32.mrf.mxu1 }

</bundles_post_ra>
